<compile_context>
chip_gen: v5e
topology: v5e:2x2
jax: 0.10.0
libtpu: 0.0.40
codegen_flags: <defaults>
</compile_context>

<pallas_src>
import jax
import jax.numpy as jnp
from jax.experimental import pallas as pl
from jax.experimental.pallas import tpu as pltpu


def _round_up(x, m):
    return (x + m - 1) // m * m


def _sublane_multiple(dtype):
    # Native vreg packing: f32 -> 8 sublanes, bf16 -> 16, int8/fp8 -> 32.
    return max(8, 32 // jnp.dtype(dtype).itemsize)


def _vmem_limit_bytes():
    cap = 64 * 1024 * 1024
    try:
        cap = int(getattr(pltpu.get_tpu_info(), "vmem_capacity_bytes", cap))
    except Exception:
        pass
    # ~3/4 of physical VMEM (96 MiB v5e/v6e, 48 MiB v7x), capped, leaving headroom
    # for compiler-internal scratch.
    return int(min(cap * 3 // 4, 100 * 1024 * 1024))


# ---------------------------------------------------------------------------
# Kernels
# ---------------------------------------------------------------------------

def _linear_kernel(x_ref, wt_ref, bias_ref, o_ref, acc_ref):
    """Plain linear: y = x @ W.T + bias (K-reduction innermost)."""
    k = pl.program_id(2)

    @pl.when(k == 0)
    def _():
        acc_ref[...] = jnp.zeros_like(acc_ref)

    acc_ref[...] += jnp.dot(x_ref[...], wt_ref[...],
                            preferred_element_type=jnp.float32)

    @pl.when(k == pl.num_programs(2) - 1)
    def _():
        o_ref[...] = (acc_ref[...] + bias_ref[...]).astype(o_ref.dtype)


def _lora_linear_kernel(xa_ref, x_ref, wt_ref, bt_ref, bias_ref, o_ref, acc_ref):
    """y = x @ W.T + (x @ A.T) @ (scale*B).T + bias.

    xa_ref holds the precomputed rank-r projection x @ A.T (scale folded into
    bt), so the only per-k work is the main MXU matmul; the cheap (tm,r)@(r,tn)
    LoRA matmul runs once in the last-K epilogue.
    """
    k = pl.program_id(2)

    @pl.when(k == 0)
    def _():
        acc_ref[...] = jnp.zeros_like(acc_ref)

    acc_ref[...] += jnp.dot(x_ref[...], wt_ref[...],
                            preferred_element_type=jnp.float32)

    @pl.when(k == pl.num_programs(2) - 1)
    def _():
        lora = jnp.dot(xa_ref[...], bt_ref[...],
                       preferred_element_type=jnp.float32)
        o_ref[...] = (acc_ref[...] + lora + bias_ref[...]).astype(o_ref.dtype)


# ---------------------------------------------------------------------------
# Parameter preparation (run once per weight update, not per forward call)
# ---------------------------------------------------------------------------

def prepare_linear_params(weight, bias=None, lora_A=None, lora_B=None,
                          scale=1.0, enable_lora=True, *, tn=512, tk=None):
    """Transpose + pad weights into the lane-dense (K, N) layout the kernel
    consumes.  Hoisted out of the hot path so the HBM->HBM transpose/pad copy
    is paid once per weight update."""
    out_f, in_f = weight.shape
    dt = weight.dtype
    itemsize = jnp.dtype(dt).itemsize
    if tk is None:
        tk = 2048 if itemsize <= 2 else 1024

    n_pad128 = _round_up(out_f, 128)
    k_pad128 = _round_up(in_f, 128)
    tn = min(tn, n_pad128)
    tk = min(tk, k_pad128)
    # Keep >=2 tiles along the parallel N axis when possible so both v7x
    # TensorCores get work even when M is a single tile.
    if n_pad128 // tn < 2 and n_pad128 >= 256:
        tn = _round_up(n_pad128 // 2, 128)
    n_pad = _round_up(out_f, tn)
    k_pad = _round_up(in_f, tk)

    wt = jnp.pad(weight.T, ((0, k_pad - in_f), (0, n_pad - out_f)))      # (K, N)
    if bias is None:
        bias = jnp.zeros((out_f,), dt)
    bias_p = jnp.pad(bias.reshape(1, out_f).astype(dt),
                     ((0, 0), (0, n_pad - out_f)))                        # (1, N)

    prep = dict(in_features=in_f, out_features=out_f, dtype=dt,
                tn=tn, tk=tk, n_pad=n_pad, k_pad=k_pad,
                wt=wt, bias=bias_p, enable_lora=bool(enable_lora),
                lora_A=None, bt=None, rank=0)
    if enable_lora:
        rank = lora_A.shape[0]
        # Fold `scale` into B so the kernel epilogue has no broadcast multiply.
        bt = jnp.pad((lora_B.astype(jnp.float32) * float(scale)).astype(dt).T,
                     ((0, 0), (0, n_pad - out_f)))                        # (r, N)
        prep.update(lora_A=lora_A.astype(dt), bt=bt, rank=rank)
    return prep


# ---------------------------------------------------------------------------
# Forward pass
# ---------------------------------------------------------------------------

def lora_linear_apply(x, prep, *, tm=512):
    *lead, in_f = x.shape
    assert in_f == prep["in_features"]
    out_f = prep["out_features"]
    dt = prep["dtype"]
    tn, tk = prep["tn"], prep["tk"]
    n_pad, k_pad = prep["n_pad"], prep["k_pad"]
    itemsize = jnp.dtype(x.dtype).itemsize

    x2 = x.reshape(-1, in_f)
    m = x2.shape[0]
    sub = _sublane_multiple(x.dtype)
    tm = min(tm, _round_up(m, sub))
    m_pad = _round_up(m, tm)

    # Zero padding along K is reduction-safe.
    xp = jnp.pad(x2, ((0, m_pad - m), (0, k_pad - in_f)))

    grid = (m_pad // tm, n_pad // tn, k_pad // tk)
    m_tiles, n_tiles = m_pad // tm, n_pad // tn
    params = pltpu.CompilerParams(
        dimension_semantics=("parallel", "parallel", "arbitrary"),
        vmem_limit_bytes=_vmem_limit_bytes(),
    )

    if prep["enable_lora"]:
        rank = prep["rank"]
        # Rank-r projection hoisted out of the kernel: a tiny (m, r) matmul.
        xa = jnp.dot(x2, prep["lora_A"].T).astype(dt)
        xa = jnp.pad(xa, ((0, m_pad - m), (0, 0)))                       # (M, r)

        flops = (2 * m * in_f * out_f + 2 * m * in_f * rank
                 + 2 * m * rank * out_f)
        bytes_accessed = itemsize * (m_pad * k_pad * n_tiles
                                     + k_pad * n_pad * m_tiles
                                     + m_pad * rank + rank * n_pad
                                     + n_pad + m_pad * n_pad)

        out = pl.pallas_call(
            _lora_linear_kernel,
            out_shape=jax.ShapeDtypeStruct((m_pad, n_pad), x.dtype),
            grid_spec=pltpu.PrefetchScalarGridSpec(
                num_scalar_prefetch=0,
                grid=grid,
                in_specs=[
                    pl.BlockSpec((tm, rank), lambda i, j, k: (i, 0)),    # x @ A.T
                    pl.BlockSpec((tm, tk), lambda i, j, k: (i, k)),      # x
                    pl.BlockSpec((tk, tn), lambda i, j, k: (k, j)),      # W.T
                    pl.BlockSpec((rank, tn), lambda i, j, k: (0, j)),    # (scale*B).T
                    pl.BlockSpec((1, tn), lambda i, j, k: (0, j)),       # bias
                ],
                out_specs=pl.BlockSpec((tm, tn), lambda i, j, k: (i, j)),
                scratch_shapes=[pltpu.VMEM((tm, tn), jnp.float32)],
            ),
            compiler_params=params,
            cost_estimate=pl.CostEstimate(
                flops=flops, transcendentals=0, bytes_accessed=bytes_accessed),
        )(xa, xp, prep["wt"], prep["bt"], prep["bias"])
    else:
        flops = 2 * m * in_f * out_f
        bytes_accessed = itemsize * (m_pad * k_pad * n_tiles
                                     + k_pad * n_pad * m_tiles
                                     + n_pad + m_pad * n_pad)
        out = pl.pallas_call(
            _linear_kernel,
            out_shape=jax.ShapeDtypeStruct((m_pad, n_pad), x.dtype),
            grid_spec=pltpu.PrefetchScalarGridSpec(
                num_scalar_prefetch=0,
                grid=grid,
                in_specs=[
                    pl.BlockSpec((tm, tk), lambda i, j, k: (i, k)),      # x
                    pl.BlockSpec((tk, tn), lambda i, j, k: (k, j)),      # W.T
                    pl.BlockSpec((1, tn), lambda i, j, k: (0, j)),       # bias
                ],
                out_specs=pl.BlockSpec((tm, tn), lambda i, j, k: (i, j)),
                scratch_shapes=[pltpu.VMEM((tm, tn), jnp.float32)],
            ),
            compiler_params=params,
            cost_estimate=pl.CostEstimate(
                flops=flops, transcendentals=0, bytes_accessed=bytes_accessed),
        )(xp, prep["wt"], prep["bias"])

    return out[:m, :out_f].reshape(*lead, out_f)


def lora_linear(x, weight, bias=None, lora_A=None, lora_B=None, scale=1.0,
                enable_lora=True, *, tm=512, tn=512, tk=None):
    """Convenience wrapper (prepare + apply). For repeated forwards with fixed
    weights, call prepare_linear_params once and lora_linear_apply per step."""
    prep = prepare_linear_params(weight, bias, lora_A, lora_B, scale,
                                 enable_lora, tn=tn, tk=tk)
    return lora_linear_apply(x, prep, tm=tm)


if __name__ == "__main__":
    # Module hyper-params (small, consistent with the PyTorch __init__).
    in_features = 32
    out_features = 64
    rank = 4
    alpha = 8
    scale = alpha / rank

    key = jax.random.PRNGKey(0)
    k_x, k_w, k_a, k_b = jax.random.split(key, 4)

    batch, seq = 2, 8
    x = jax.random.normal(k_x, (batch, seq, in_features), dtype=jnp.float32)
    weight = jax.random.normal(k_w, (out_features, in_features), dtype=jnp.float32)
    bias = jnp.zeros((out_features,), dtype=jnp.float32)
    # lora_B is zeros-initialized in the module; use a small random B here so
    # the LoRA branch contributes non-trivially to the numerics check.
    lora_A = jax.random.normal(k_a, (rank, in_features), dtype=jnp.float32)
    lora_B = 0.01 * jax.random.normal(k_b, (out_features, rank), dtype=jnp.float32)

    # --- LoRA-enabled path (prepare once, apply) ---
    prep = prepare_linear_params(weight, bias, lora_A, lora_B, scale,
                                 enable_lora=True)
    y = jax.block_until_ready(lora_linear_apply(x, prep))

    w_eff = weight + scale * (lora_B @ lora_A)
    y_ref = x @ w_eff.T + bias
    assert y.shape == (batch, seq, out_features)
    assert jnp.allclose(y, y_ref, atol=1e-4, rtol=1e-4)

    # --- Plain F.linear path (LoRA statically disabled) ---
    y0 = jax.block_until_ready(
        lora_linear(x, weight, bias, enable_lora=False)
    )
    assert jnp.allclose(y0, x @ weight.T + bias, atol=1e-4, rtol=1e-4)

    print("KERNEL_OK")
</pallas_src>

<mosaic_0001>
module attributes {stable_mosaic.version = 11 : i64} {
  func.func @_lora_linear_kernel(%arg0: i32, %arg1: i32, %arg2: i32, %arg3: memref<16x4xf32, #tpu.memory_space<vmem>>, %arg4: memref<16x128xf32, #tpu.memory_space<vmem>>, %arg5: memref<128x128xf32, #tpu.memory_space<vmem>>, %arg6: memref<4x128xf32, #tpu.memory_space<vmem>>, %arg7: memref<1x128xf32, #tpu.memory_space<vmem>>, %arg8: memref<16x128xf32, #tpu.memory_space<vmem>>, %arg9: memref<16x128xf32, #tpu.memory_space<vmem>>) attributes {dimension_semantics = [#tpu.dimension_semantics<parallel>, #tpu.dimension_semantics<parallel>, #tpu.dimension_semantics<arbitrary>], iteration_bounds = array<i64: 1, 1, 1>, scalar_prefetch = 0 : i64, scratch_operands = 1 : i64, tpu.core_type = #tpu.core_type<tc>, window_params = [{transform_indices = @transform_0, window_bounds = array<i64: 16, 4>}, {transform_indices = @transform_1, window_bounds = array<i64: 16, 128>}, {transform_indices = @transform_2, window_bounds = array<i64: 128, 128>}, {transform_indices = @transform_3, window_bounds = array<i64: 4, 128>}, {transform_indices = @transform_4, window_bounds = array<i64: 1, 128>}, {transform_indices = @transform_5, window_bounds = array<i64: 16, 128>}]} {
    %c0_i32 = arith.constant 0 : i32
    %0 = arith.cmpi eq, %arg2, %c0_i32 : i32
    %1 = arith.extui %0 : i1 to i32
    %c0_i32_0 = arith.constant 0 : i32
    %2 = arith.cmpi ne, %1, %c0_i32_0 : i32
    scf.if %2 {
      %cst_10 = arith.constant 0.000000e+00 : f32
      %12 = vector.broadcast %cst_10 : f32 to vector<16x128xf32>
      %c0_11 = arith.constant 0 : index
      %c0_12 = arith.constant 0 : index
      %13 = vector.load %arg9[%c0_11, %c0_12] : memref<16x128xf32, #tpu.memory_space<vmem>>, vector<16x128xf32>
      tpu.vector_store %arg9[%c0_11, %c0_12], %12 {strides = array<i32>} : memref<16x128xf32, #tpu.memory_space<vmem>>, vector<16x128xf32>,
    } else {
    }
    %c0 = arith.constant 0 : index
    %c0_1 = arith.constant 0 : index
    %3 = vector.load %arg9[%c0, %c0_1] : memref<16x128xf32, #tpu.memory_space<vmem>>, vector<16x128xf32>
    %c0_2 = arith.constant 0 : index
    %c0_3 = arith.constant 0 : index
    %4 = vector.load %arg4[%c0_2, %c0_3] : memref<16x128xf32, #tpu.memory_space<vmem>>, vector<16x128xf32>
    %c0_4 = arith.constant 0 : index
    %c0_5 = arith.constant 0 : index
    %5 = vector.load %arg5[%c0_4, %c0_5] : memref<128x128xf32, #tpu.memory_space<vmem>>, vector<128x128xf32>
    %cst = arith.constant dense<0.000000e+00> : vector<16x128xf32>
    %6 = tpu.matmul %4, %5, %cst {dimension_numbers = #tpu.dot_dimension_numbers<[1], [0], [0], [1], [0, 0, 1, 1], [], []>} : vector<16x128xf32>, vector<128x128xf32>, vector<16x128xf32> -> vector<16x128xf32>
    %7 = arith.addf %3, %6 : vector<16x128xf32>
    %c0_6 = arith.constant 0 : index
    %c0_7 = arith.constant 0 : index
    %8 = vector.load %arg9[%c0_6, %c0_7] : memref<16x128xf32, #tpu.memory_space<vmem>>, vector<16x128xf32>
    tpu.vector_store %arg9[%c0_6, %c0_7], %7 {strides = array<i32>} : memref<16x128xf32, #tpu.memory_space<vmem>>, vector<16x128xf32>,
    %c0_i32_8 = arith.constant 0 : i32
    %9 = arith.cmpi eq, %arg2, %c0_i32_8 : i32
    %10 = arith.extui %9 : i1 to i32
    %c0_i32_9 = arith.constant 0 : i32
    %11 = arith.cmpi ne, %10, %c0_i32_9 : i32
    scf.if %11 {
      %c0_10 = arith.constant 0 : index
      %c0_11 = arith.constant 0 : index
      %12 = vector.load %arg3[%c0_10, %c0_11] : memref<16x4xf32, #tpu.memory_space<vmem>>, vector<16x4xf32>
      %c0_12 = arith.constant 0 : index
      %c0_13 = arith.constant 0 : index
      %13 = vector.load %arg6[%c0_12, %c0_13] : memref<4x128xf32, #tpu.memory_space<vmem>>, vector<4x128xf32>
      %cst_14 = arith.constant dense<0.000000e+00> : vector<16x128xf32>
      %14 = tpu.matmul %12, %13, %cst_14 {dimension_numbers = #tpu.dot_dimension_numbers<[1], [0], [0], [1], [0, 0, 1, 1], [], []>} : vector<16x4xf32>, vector<4x128xf32>, vector<16x128xf32> -> vector<16x128xf32>
      %c0_15 = arith.constant 0 : index
      %c0_16 = arith.constant 0 : index
      %15 = vector.load %arg9[%c0_15, %c0_16] : memref<16x128xf32, #tpu.memory_space<vmem>>, vector<16x128xf32>
      %16 = arith.addf %15, %14 : vector<16x128xf32>
      %c0_17 = arith.constant 0 : index
      %c0_18 = arith.constant 0 : index
      %17 = vector.load %arg7[%c0_17, %c0_18] : memref<1x128xf32, #tpu.memory_space<vmem>>, vector<1x128xf32>
      %18 = vector.broadcast %17 : vector<1x128xf32> to vector<16x128xf32>
      %19 = arith.addf %16, %18 : vector<16x128xf32>
      %c0_19 = arith.constant 0 : index
      %c0_20 = arith.constant 0 : index
      %20 = vector.load %arg8[%c0_19, %c0_20] : memref<16x128xf32, #tpu.memory_space<vmem>>, vector<16x128xf32>
      tpu.vector_store %arg8[%c0_19, %c0_20], %19 {strides = array<i32>} : memref<16x128xf32, #tpu.memory_space<vmem>>, vector<16x128xf32>,
    } else {
    }
    return
  }
  func.func @transform_0(%arg0: i32, %arg1: i32, %arg2: i32) -> (i32, i32) {
    %c0_i32 = arith.constant 0 : i32
    %c0_i32_0 = arith.constant 0 : i32
    return %arg0, %c0_i32 : i32, i32
  }
  func.func @transform_1(%arg0: i32, %arg1: i32, %arg2: i32) -> (i32, i32) {
    %c0_i32 = arith.constant 0 : i32
    return %arg0, %arg2 : i32, i32
  }
  func.func @transform_2(%arg0: i32, %arg1: i32, %arg2: i32) -> (i32, i32) {
    %c0_i32 = arith.constant 0 : i32
    return %arg2, %arg1 : i32, i32
  }
  func.func @transform_3(%arg0: i32, %arg1: i32, %arg2: i32) -> (i32, i32) {
    %c0_i32 = arith.constant 0 : i32
    %c0_i32_0 = arith.constant 0 : i32
    return %c0_i32, %arg1 : i32, i32
  }
  func.func @transform_4(%arg0: i32, %arg1: i32, %arg2: i32) -> (i32, i32) {
    %c0_i32 = arith.constant 0 : i32
    %c0_i32_0 = arith.constant 0 : i32
    return %c0_i32, %arg1 : i32, i32
  }
  func.func @transform_5(%arg0: i32, %arg1: i32, %arg2: i32) -> (i32, i32) {
    %c0_i32 = arith.constant 0 : i32
    return %arg0, %arg1 : i32, i32
  }
}

</mosaic_0001>

<bundles_post_ra>
// kernel: tpu_custom_call.1
= control target key start
LH: loop header
LB: loop body
LE: loop exit
PB: predicated region body
PF: predicated region fallthrough
CT: control target
= control target key end

     0   :  { %10 = vsyncpa [#allocation4], 0  ;;  %s303_s0 = inlined_call_operand.vmem [shape: f32[16,4], index: 0, kind: input, shape index: {}]   ;;  %s304_s1 = inlined_call_operand.vmem [shape: f32[16,128], index: 1, kind: input, shape index: {}]   ;;  %s305_s2 = inlined_call_operand.hbm [shape: f32[128,128], index: 2, kind: input, shape index: {}]   ;;  %s306_s3 = inlined_call_operand.vmem [shape: f32[4,128], index: 3, kind: input, shape index: {}]   ;;  %s307_s4 = inlined_call_operand.vmem [shape: f32[1,128], index: 4, kind: input, shape index: {}]   ;;  %s308_s5 = inlined_call_operand.hbm [shape: f32[16,128], index: 5, kind: output, shape index: {}]  }
   0x1   :  { %11 = vsyncpa [#allocation5], 0  ;;  %s20_s20 = sshll.u32 %s305_s2, 4  ;;  %s237_s21 = smov [#allocation3]   ;;  %s21_s20 = int_to_ptr.hbm [resolvable:$true] %s20_s20 }
   0x2   :  { %s22_s22 = sshll.u32 %s237_s21, 4  ;;  %s238_s23 = smov 128   ;;  %s23_s22 = int_to_ptr.vmem [resolvable:$true] %s22_s22 }
   0x3   :  { %s239_s24 = smov 8  }
   0x4   :  { %28 = dma.hbm_to_vmem [thread:$0]  %s21_s20, 2048, %s23_s22, [#allocation4], %s238_s23, %s238_s23, %s239_s24  }
   0x5   :  { %233 = dma.done.wait [#allocation4], 2048  }
   0x6   :  { %234 = vsyncadd [#allocation4], 4294965248  ;;  %v62_v0 = vld [vmem:[#allocation3 + $0x78] sm:$0xff]  ;;  %v61_v1 = vld [vmem:[#allocation3 + $0x70] sm:$0xff]  ;;  %vm103_vm0 = vcmask 1043456   ;;  %vm96_vm1 = vcmask 31744  }
   0x7   :  { %63 = vmatpush.msra.mxu0 %v62_v0  ;;  %164 = vmatpush.msra.mxu2 %v62_v0  ;;  %v60_v2 = vld [vmem:[#allocation3 + $0x68] sm:$0xff]  ;;  %v59_v3 = vld [vmem:[#allocation3 + $0x60] sm:$0xff]  ;;  %v58_v6 = vld [vmem:[#allocation3 + $0x58] sm:$0xff]  ;;  %s240_s9 = smov [#allocation6]  }
   0x8   :  { %v95_v4 = vld [vmem:[%s306_s3] sm:$0xf]  ;;  %v57_v7 = vld [vmem:[#allocation3 + $0x50] sm:$0xff]  ;;  %v56_v8 = vld [vmem:[#allocation3 + $0x48] sm:$0xff]  ;;  %s146_s10 = sshll.u32 %s240_s9, 4  ;;  %s147_s10 = int_to_ptr.vmem [resolvable:$true] %s146_s10 }
   0x9   :  { %64 = vmatpush.msra.mxu0 %v61_v1  ;;  %165 = vmatpush.msra.mxu2 %v61_v1  ;;  %v93_v5 = vld [vmem:[%s303_s0] sm:$0xff]  ;;  %v94_v10 = vld [vmem:[%s303_s0 + $0x8] sm:$0xff]  ;;  %v54_v11 = vld [vmem:[#allocation3 + $0x38] sm:$0xff] }
   0xa   :  { %161 = vmatpush.msk.msra.mxu1 %vm103_vm0, %v95_v4  ;;  %v55_v9 = vld [vmem:[#allocation3 + $0x40] sm:$0xff]  ;;  %v53_v12 = vld [vmem:[#allocation3 + $0x30] sm:$0xff]  ;;  %v52_v13 = vld [vmem:[#allocation3 + $0x28] sm:$0xff] }
   0xb   :  { %65 = vmatpush.msra.mxu0 %v60_v2  ;;  %166 = vmatpush.msra.mxu2 %v60_v2  ;;  %v51_v14 = vld [vmem:[#allocation3 + $0x20] sm:$0xff]  ;;  %v50_v15 = vld [vmem:[#allocation3 + $0x18] sm:$0xff]  ;;  %v49_v16 = vld [vmem:[#allocation3 + $0x10] sm:$0xff] }
   0xc   :  { %162 = vmatmul.msk.f32.vlgmr.msra.gmra.mxu1 %vm96_vm1, %v93_v5  ;;  %v48_v17 = vld [vmem:[#allocation3 + $0x8] sm:$0xff]  ;;  %v47_v18 = vld [vmem:[#allocation3] sm:$0xff] }
   0xd   :  { %66 = vmatpush.msra.mxu0 %v59_v3  ;;  %167 = vmatpush.msra.mxu2 %v59_v3  ;;  %v45_v19 = vld [vmem:[%s304_s1] sm:$0xff]  ;;  %v46_v20 = vld [vmem:[%s304_s1 + $0x8] sm:$0xff]  ;;  %s148_s1 = sshll.u32 %s308_s5, 4  ;;  %s149_s1 = int_to_ptr.hbm [resolvable:$true] %s148_s1 }
   0xe   :  { %v184_v22 = vld [vmem:[%s307_s4] ss:$0 sm:$0xff] }
   0xf   :  { %67 = vmatpush.msra.mxu0 %v58_v6  ;;  %168 = vmatpush.msra.mxu2 %v58_v6 }
  0x11   :  { %68 = vmatpush.msra.mxu0 %v57_v7  ;;  %169 = vmatpush.msra.mxu2 %v57_v7 }
  0x13   :  { %69 = vmatpush.msra.mxu0 %v56_v8  ;;  %170 = vmatpush.msra.mxu2 %v56_v8 }
  0x14   :  { %163 = vmatmul.msk.f32.gmra.mxu1 %vm96_vm1, %v94_v10 }
  0x15   :  { %70 = vmatpush.msra.mxu0 %v55_v9  ;;  %171 = vmatpush.msra.mxu2 %v55_v9 }
  0x17   :  { %71 = vmatpush.msra.mxu0 %v54_v11  ;;  %172 = vmatpush.msra.mxu2 %v54_v11 }
  0x19   :  { %72 = vmatpush.msra.mxu0 %v53_v12  ;;  %173 = vmatpush.msra.mxu2 %v53_v12 }
  0x1b   :  { %73 = vmatpush.msra.mxu0 %v52_v13  ;;  %174 = vmatpush.msra.mxu2 %v52_v13 }
  0x1d   :  { %74 = vmatpush.msra.mxu0 %v51_v14  ;;  %175 = vmatpush.msra.mxu2 %v51_v14 }
  0x1f   :  { %75 = vmatpush.msra.mxu0 %v50_v15  ;;  %176 = vmatpush.msra.mxu2 %v50_v15 }
  0x21   :  { %76 = vmatpush.msra.mxu0 %v49_v16  ;;  %177 = vmatpush.msra.mxu2 %v49_v16 }
  0x23   :  { %77 = vmatpush.msra.mxu0 %v48_v17  ;;  %178 = vmatpush.msra.mxu2 %v48_v17 }
  0x25   :  { %78 = vmatpush.msra.mxu0 %v47_v18  ;;  %179 = vmatpush.msra.mxu2 %v47_v18 }
  0x26   :  { %79 = vmatmul.f32.vlgmr.msra.gmra.mxu0 %v45_v19  ;;  %82 = vmatmul.f32.vlgmr.msra.gmra.mxu2 %v46_v20 }
  0x89   :  { %v124_v21 = vpop.f32.mrf.mxu1 }
  0x91   :  { %v127_v26 = vpop.f32.mrf.mxu1 }
  0xa3   :  { %v80_v23 = vpop.f32.mrf.mxu0 }
  0xa4   :  { %v132_v24 = vadd.f32 %v124_v21, %v80_v23 }
  0xa6   :  { %v138_v25 = vadd.f32 %v184_v22, %v132_v24 }
  0xa8   :  { %140 = vst [vmem:[#allocation6] sm:$0xff] %v138_v25 }
  0xa9   :  { %v83_v27 = vpop.f32.mrf.mxu2 }
  0xaa   :  { %v133_v28 = vadd.f32 %v127_v26, %v83_v27 }
  0xac   :  { %v139_v29 = vadd.f32 %v184_v22, %v133_v28 }
  0xae   :  { %141 = vst [vmem:[#allocation6 + $0x8] sm:$0xff] %v139_v29 }
  0xaf   :  { %154 = dma.vmem_to_hbm [thread:$0]  %s147_s10, 256, %s149_s1, [#allocation5], %s238_s23, %s238_s23, %s239_s24  }
  0xb0   :  { %235 = dma.done.wait [#allocation5], 256  }
  0xb1   :  { %236 = vsyncadd [#allocation5], 4294967040 }
  0xb2   :  { %159 = vsyncpa [#allocation4], 1 }
  0xb3   :  { %160 = vsyncpa [#allocation5], 1 }

</bundles_post_ra>
